<compile_context>
chip_gen: v7x
topology: tpu7x:2x2x1
jax: 0.10.0
libtpu: 0.0.40
codegen_flags: <defaults>
</compile_context>

<pallas_src>
import jax
import jax.numpy as jnp
from jax.experimental import pallas as pl
from jax.experimental.pallas import tpu as pltpu


def _round_up(x, m):
    return ((x + m - 1) // m) * m


def _cdiv(a, b):
    return -(-a // b)


def _sublane_granule(dtype):
    bpe = jnp.dtype(dtype).itemsize
    return {4: 8, 2: 16, 1: 32}.get(bpe, 8)


def _conv1x1_kernel(x_ref, w_ref, b_ref, o_ref):
    # x_ref: (B_n, C_in, t_hw)   w_ref: (C_out, C_in)   b_ref: (C_out, 1)
    # o_ref: (B_n, C_out, t_hw)
    #
    # With tiny channel counts the MXU op is mostly padding, but the kernel is
    # HBM/DMA-bound either way, so jnp.dot (f32 accumulation) is kept for
    # robustness across channel sizes (an unrolled VPU broadcast-FMA would
    # only matter if the bundle dump showed MXU/vex stalls — it does not).
    w = w_ref[...]
    b = b_ref[...].astype(jnp.float32)                       # (C_out, 1) broadcast
    for i in range(x_ref.shape[0]):                          # static, small batch block
        acc = jnp.dot(w, x_ref[i], preferred_element_type=jnp.float32)
        o_ref[i] = (acc + b).astype(o_ref.dtype)


@jax.jit
def residual_forward(x_nchw, weight, bias):
    """Forward of Residual: 1x1 conv.

    x_nchw: (N, C_in, H, W)
    weight: (C_out, C_in, 1, 1)  (PyTorch Conv2d layout)
    bias:   (C_out,)
    """
    N, C_in, H, W = x_nchw.shape
    C_out = weight.shape[0]
    HW = H * W
    dtype = x_nchw.dtype
    bpe = jnp.dtype(dtype).itemsize

    # Free reshapes (no data movement): NCHW -> (N, C_in, H*W).
    x = x_nchw.reshape(N, C_in, HW)
    w_mat = weight.reshape(C_out, C_in)            # (C_out, C_in)
    b_mat = bias.reshape(C_out, 1)                 # (C_out, 1)

    # ---------------- VMEM accounting (padded, generation-aware) ------------
    sub = _sublane_granule(dtype)
    c_in_pad = _round_up(C_in, sub)                # sublane-padded channel rows
    c_out_pad = _round_up(C_out, sub)

    try:
        vmem_cap = int(pltpu.get_tpu_info().vmem_capacity_bytes)
    except Exception:
        vmem_cap = 64 * 1024 * 1024                # conservative: assume v7x
    # 48 MiB on v7x (64 MiB physical), 96 MiB on v5e/v6e (128 MiB physical).
    vmem_limit = min(vmem_cap * 3 // 4, 96 * 1024 * 1024)

    # Resident weight + bias blocks (double-buffered by the pipeline).
    w_bytes = c_out_pad * _round_up(max(C_in, 1), 128) * bpe
    b_bytes = c_out_pad * 128 * bpe
    resident = 2 * (w_bytes + b_bytes)

    # Budget for the double-buffered x + out tiles (headroom for Mosaic scratch).
    tile_budget = int(vmem_limit * 0.7) - resident
    col_bytes = (c_in_pad + c_out_pad) * bpe       # one HW column, one image, one buffer
    if tile_budget < 4 * col_bytes * 128:
        # TODO(synk): tile the C_out / C_in axes for very large channel counts.
        raise ValueError(
            "Residual 1x1 conv: channel count too large for VMEM-resident "
            "weights with this kernel; add a C_out/C_in grid axis.")
    max_cols = tile_budget // (2 * col_bytes)      # max B_n * t_hw (double-buffered)

    # ---------------- per-step byte target ----------------------------------
    # Amortize the ~600-cycle per-grid-step overhead: aim for >= ~4 MiB of
    # combined in+out tile per step.
    TARGET_STEP_BYTES = 4 * 1024 * 1024
    target_cols = max(128, TARGET_STEP_BYTES // col_bytes)

    # 1) spatial tile: lane-dense multiple of 128, or the full HW extent.
    want_cols = min(max_cols, target_cols)
    if want_cols >= HW:
        t_hw = HW
    else:
        t_hw = max(128, (want_cols // 128) * 128)

    # 2) batch block: only grows when one image's HW can't reach the target
    #    (big-N / small-HW regime).
    if t_hw >= HW:
        B_n = max(1, min(N, target_cols // HW, max_cols // max(HW, 1)))
    else:
        B_n = 1

    # 3) make sure v7x's two TensorCores both get work (>= 4 grid steps), as
    #    long as splitting keeps steps fat enough (>= ~1 MiB each); tiny
    #    problems stay as a single cheap step.
    MIN_STEPS = 4
    MIN_STEP_BYTES = 1 * 1024 * 1024
    while _cdiv(N, B_n) * _cdiv(HW, t_hw) < MIN_STEPS:
        step_bytes = B_n * min(t_hw, HW) * col_bytes
        if step_bytes < 2 * MIN_STEP_BYTES:
            break
        if B_n > 1:
            B_n = (B_n + 1) // 2
        elif min(t_hw, HW) >= 256:
            half = ((min(t_hw, HW) // 2) // 128) * 128
            if half < 128:
                break
            t_hw = half
        else:
            break

    grid = (_cdiv(N, B_n), _cdiv(HW, t_hw))

    cost = pl.CostEstimate(
        flops=2 * N * HW * C_in * C_out,
        transcendentals=0,
        bytes_accessed=bpe * (N * HW * (C_in + C_out) + C_in * C_out + C_out),
    )

    out = pl.pallas_call(
        _conv1x1_kernel,
        out_shape=jax.ShapeDtypeStruct((N, C_out, HW), dtype),
        grid_spec=pltpu.PrefetchScalarGridSpec(
            num_scalar_prefetch=0,
            grid=grid,
            in_specs=[
                pl.BlockSpec((B_n, C_in, t_hw), lambda n, j: (n, 0, j)),  # x tile
                pl.BlockSpec((C_out, C_in), lambda n, j: (0, 0)),         # weight
                pl.BlockSpec((C_out, 1), lambda n, j: (0, 0)),            # bias
            ],
            out_specs=pl.BlockSpec((B_n, C_out, t_hw), lambda n, j: (n, 0, j)),
        ),
        compiler_params=pltpu.CompilerParams(
            dimension_semantics=("parallel", "parallel"),
            vmem_limit_bytes=vmem_limit,
        ),
        cost_estimate=cost,
    )(x, w_mat, b_mat)

    # Free reshape: (N, C_out, H*W) -> NCHW.
    return out.reshape(N, C_out, H, W)


def init_params(key, d_input, d_output, dtype=jnp.float32):
    """Deterministic Conv2d(d_input, d_output, 1) parameters (Kaiming-uniform-like)."""
    k_w, k_b = jax.random.split(key)
    fan_in = d_input  # kernel_size = 1
    bound = 1.0 / jnp.sqrt(fan_in)
    weight = jax.random.uniform(k_w, (d_output, d_input, 1, 1), dtype,
                                minval=-bound, maxval=bound)
    bias = jax.random.uniform(k_b, (d_output,), dtype,
                              minval=-bound, maxval=bound)
    return weight, bias


if __name__ == "__main__":
    key = jax.random.PRNGKey(0)
    k_x, k_p = jax.random.split(key)

    N, C_in, H, W = 2, 4, 16, 16
    C_out = 8

    x = jax.random.normal(k_x, (N, C_in, H, W), dtype=jnp.float32)
    weight, bias = init_params(k_p, C_in, C_out)

    out = residual_forward(x, weight, bias)
    out = jax.block_until_ready(out)

    # Reference: plain-JAX 1x1 conv (channel einsum) in NCHW.
    ref = jnp.einsum("nchw,oc->nohw", x, weight.reshape(C_out, C_in)) \
          + bias.reshape(1, C_out, 1, 1)
    assert out.shape == (N, C_out, H, W), out.shape
    assert jnp.allclose(out, ref, atol=1e-5, rtol=1e-5), \
        float(jnp.max(jnp.abs(out - ref)))

    print("KERNEL_OK")
</pallas_src>

<mosaic_0001>
module attributes {stable_mosaic.version = 11 : i64} {
  func.func @_conv1x1_kernel(%arg0: i32, %arg1: i32, %arg2: memref<2x4x256xf32, #tpu.memory_space<vmem>>, %arg3: memref<8x4xf32, #tpu.memory_space<vmem>>, %arg4: memref<8x1xf32, #tpu.memory_space<vmem>>, %arg5: memref<2x8x256xf32, #tpu.memory_space<vmem>>) attributes {dimension_semantics = [#tpu.dimension_semantics<parallel>, #tpu.dimension_semantics<parallel>], iteration_bounds = array<i64: 1, 1>, scalar_prefetch = 0 : i64, scratch_operands = 0 : i64, tpu.core_type = #tpu.core_type<tc>, window_params = [{transform_indices = @transform_0, window_bounds = array<i64: 2, 4, 256>}, {pipeline_mode = #tpu.pipeline_mode<synchronous>, transform_indices = @transform_1, window_bounds = array<i64: 8, 4>}, {pipeline_mode = #tpu.pipeline_mode<synchronous>, transform_indices = @transform_2, window_bounds = array<i64: 8, 1>}, {transform_indices = @transform_3, window_bounds = array<i64: 2, 8, 256>}]} {
    %c0 = arith.constant 0 : index
    %c0_0 = arith.constant 0 : index
    %0 = vector.load %arg3[%c0, %c0_0] : memref<8x4xf32, #tpu.memory_space<vmem>>, vector<8x4xf32>
    %c0_1 = arith.constant 0 : index
    %c0_2 = arith.constant 0 : index
    %1 = vector.load %arg4[%c0_1, %c0_2] : memref<8x1xf32, #tpu.memory_space<vmem>>, vector<8x1xf32>
    %c0_3 = arith.constant 0 : index
    %c0_4 = arith.constant 0 : index
    %c0_5 = arith.constant 0 : index
    %2 = vector.load %arg2[%c0_3, %c0_4, %c0_5] : memref<2x4x256xf32, #tpu.memory_space<vmem>>, vector<1x4x256xf32>
    %3 = vector.shape_cast %2 : vector<1x4x256xf32> to vector<4x256xf32>
    %cst = arith.constant dense<0.000000e+00> : vector<8x256xf32>
    %4 = tpu.matmul %0, %3, %cst {dimension_numbers = #tpu.dot_dimension_numbers<[1], [0], [0], [1], [0, 0, 1, 1], [], []>} : vector<8x4xf32>, vector<4x256xf32>, vector<8x256xf32> -> vector<8x256xf32>
    %5 = vector.broadcast %1 : vector<8x1xf32> to vector<8x256xf32>
    %6 = arith.addf %4, %5 : vector<8x256xf32>
    %c0_6 = arith.constant 0 : index
    %c0_7 = arith.constant 0 : index
    %c0_8 = arith.constant 0 : index
    %7 = vector.load %arg5[%c0_6, %c0_7, %c0_8] : memref<2x8x256xf32, #tpu.memory_space<vmem>>, vector<1x8x256xf32>
    %8 = vector.shape_cast %7 : vector<1x8x256xf32> to vector<8x256xf32>
    %9 = vector.shape_cast %6 : vector<8x256xf32> to vector<1x8x256xf32>
    tpu.vector_store %arg5[%c0_6, %c0_7, %c0_8], %9 {strides = array<i32>} : memref<2x8x256xf32, #tpu.memory_space<vmem>>, vector<1x8x256xf32>,
    %c1 = arith.constant 1 : index
    %c0_9 = arith.constant 0 : index
    %c0_10 = arith.constant 0 : index
    %10 = vector.load %arg2[%c1, %c0_9, %c0_10] : memref<2x4x256xf32, #tpu.memory_space<vmem>>, vector<1x4x256xf32>
    %11 = vector.shape_cast %10 : vector<1x4x256xf32> to vector<4x256xf32>
    %cst_11 = arith.constant dense<0.000000e+00> : vector<8x256xf32>
    %12 = tpu.matmul %0, %11, %cst_11 {dimension_numbers = #tpu.dot_dimension_numbers<[1], [0], [0], [1], [0, 0, 1, 1], [], []>} : vector<8x4xf32>, vector<4x256xf32>, vector<8x256xf32> -> vector<8x256xf32>
    %13 = vector.broadcast %1 : vector<8x1xf32> to vector<8x256xf32>
    %14 = arith.addf %12, %13 : vector<8x256xf32>
    %c1_12 = arith.constant 1 : index
    %c0_13 = arith.constant 0 : index
    %c0_14 = arith.constant 0 : index
    %15 = vector.load %arg5[%c1_12, %c0_13, %c0_14] : memref<2x8x256xf32, #tpu.memory_space<vmem>>, vector<1x8x256xf32>
    %16 = vector.shape_cast %15 : vector<1x8x256xf32> to vector<8x256xf32>
    %17 = vector.shape_cast %14 : vector<8x256xf32> to vector<1x8x256xf32>
    tpu.vector_store %arg5[%c1_12, %c0_13, %c0_14], %17 {strides = array<i32>} : memref<2x8x256xf32, #tpu.memory_space<vmem>>, vector<1x8x256xf32>,
    return
  }
  func.func @transform_0(%arg0: i32, %arg1: i32) -> (i32, i32, i32) {
    %c0_i32 = arith.constant 0 : i32
    %c0_i32_0 = arith.constant 0 : i32
    return %arg0, %c0_i32, %arg1 : i32, i32, i32
  }
  func.func @transform_1(%arg0: i32, %arg1: i32) -> (i32, i32) {
    %c0_i32 = arith.constant 0 : i32
    %c0_i32_0 = arith.constant 0 : i32
    %c0_i32_1 = arith.constant 0 : i32
    return %c0_i32, %c0_i32_0 : i32, i32
  }
  func.func @transform_2(%arg0: i32, %arg1: i32) -> (i32, i32) {
    %c0_i32 = arith.constant 0 : i32
    %c0_i32_0 = arith.constant 0 : i32
    %c0_i32_1 = arith.constant 0 : i32
    return %c0_i32, %c0_i32_0 : i32, i32
  }
  func.func @transform_3(%arg0: i32, %arg1: i32) -> (i32, i32, i32) {
    %c0_i32 = arith.constant 0 : i32
    %c0_i32_0 = arith.constant 0 : i32
    return %arg0, %c0_i32, %arg1 : i32, i32, i32
  }
}

</mosaic_0001>

<bundles_post_ra>
// kernel: residual_forward.1
= control target key start
LH: loop header
LB: loop body
LE: loop exit
PB: predicated region body
PF: predicated region fallthrough
CT: control target
= control target key end

     0   :  { %vm28_vm0 = vcmask 1043456   ;;  %v206_v2 = vmov 0.0   ;;  %v207_v5 = vmov 0   ;;  %vm24_vm1 = vcmask 31744   ;;  %s256_s0 = inlined_call_operand.vmem [shape: f32[2,4,256], index: 0, kind: input, shape index: {}]   ;;  %s257_s1 = inlined_call_operand.vmem [shape: f32[8,4], index: 1, kind: input, shape index: {}]   ;;  %s258_s2 = inlined_call_operand.vmem [shape: f32[8,1], index: 2, kind: input, shape index: {}]   ;;  %s259_s3 = inlined_call_operand.vmem [shape: f32[2,8,256], index: 3, kind: output, shape index: {}]  }
   0x1   :  { %v16_v0 = vld [vmem:[%s256_s0] sm:$0xff]  ;;  %v195_v1 = vld [vmem:[%s256_s0 + $0x8] sm:$0xff]  ;;  %97 = vmatprep.mubr.f32.mxu0 %v206_v2  ;;  %178 = vmatprep.mubr.f32.mxu1 %v206_v2 }
   0x2   :  { %v23_v3 = vcombine.high %v16_v0, %v16_v0  ;;  %v109_v4 = vcombine.high %v195_v1, %v195_v1  ;;  %203 = vset.pattern.permute.xlu0 %v207_v5  ;;  %v15_v6 = vld [vmem:[%s258_s2] sm:$0xff] }
   0x3   :  { %v14_v7 = vld [vmem:[%s257_s1] sm:$0xff]  ;;  %19 = vperm.xlu0 %203, %v15_v6  }
   0x4   :  { %192 = vmatprep.subr.msk.mxu0 %vm28_vm0, %v23_v3  ;;  %196 = vmatprep.subr.msk.mxu1 %vm28_vm0, %v109_v4 }
   0x5   :  { %193 = vmatpush1.msk.msra.mxu0 %vm28_vm0, %v16_v0  ;;  %197 = vmatpush1.msk.msra.mxu1 %vm28_vm0, %v195_v1 }
   0x6   :  { %194 = vmatmul.mubr.msk.f32.vlgmr.msra.gmra.mrb[0].mxu0 %vm24_vm1, %v14_v7  ;;  %198 = vmatmul.mubr.msk.f32.vlgmr.msra.gmra.mrb[0].mxu1 %vm24_vm1, %v14_v7 }
  0x82   :  { %v20_v8 = vpop.permute.xlu0 %19 }
  0xd9   :  { %v99_v9 = vpop.f32.mrb[0].mxu0  ;;  %v180_v10 = vpop.f32.mrb[0].mxu1 }
  0xda   :  { %v100_v11 = vadd.f32 %v99_v9, %v20_v8  ;;  %v181_v12 = vadd.f32 %v180_v10, %v20_v8  ;;  %v101_v13 = vpop.f32.mrb[1].mxu0  ;;  %v182_v14 = vpop.f32.mrb[1].mxu1 }
  0xdb   :  { %v102_v15 = vadd.f32 %v101_v13, %v20_v8  ;;  %v183_v16 = vadd.f32 %v182_v14, %v20_v8 }
  0xdc   :  { %104 = vst [vmem:[%s259_s3] sm:$0xff] %v100_v11  ;;  %199 = vst [vmem:[%s259_s3 + $0x10] sm:$0xff] %v181_v12 }
  0xdd   :  { %105 = vst [vmem:[%s259_s3 + $0x8] sm:$0xff] %v102_v15  ;;  %200 = vst [vmem:[%s259_s3 + $0x18] sm:$0xff] %v183_v16 }

</bundles_post_ra>
